<compile_context>
chip_gen: v7x
topology: tpu7x:2x2x1
jax: 0.10.0
libtpu: 0.0.40
codegen_flags: <defaults>
</compile_context>

<pallas_src>
import math
from functools import partial

import jax
import jax.numpy as jnp
from jax.experimental import pallas as pl
from jax.experimental.pallas import tpu as pltpu


def _round_up(x: int, m: int) -> int:
    return (x + m - 1) // m * m


def _action_encoder_kernel(nb, S, act_ref, tbias_ref, w12_ref, w3_ref, b3_ref,
                           out_ref):
    """One (tm = nb*S, W_pad) row-tile of the fused MLP.

    act_ref  : (tm, A_pad)      rows of the flattened (B*S, A) action (zero padded)
    tbias_ref: (B_tb, W_pad)    resident per-BATCH hoisted bias
                                (time_emb @ W2_time + b1 @ W2_emb + b2), f32
    w12_ref  : (A_pad, W_pad)   resident  W1 @ W2_emb   (fold of linear_1+2)
    w3_ref   : (W_pad, W_pad)   resident  W3
    b3_ref   : (1, W_pad)       resident  b3 (f32)
    out_ref  : (tm, W_pad)
    """
    Wp = out_ref.shape[-1]
    base = pl.program_id(0) * nb
    # Broadcast each batch's hoisted-bias row to its S action rows.  nb is a
    # small static int, so this unrolls into nb sublane broadcasts + a concat
    # (VPU/XLU work, negligible next to the MXU matmuls).
    rows = [jnp.broadcast_to(tbias_ref[pl.ds(base + j, 1), :], (S, Wp))
            for j in range(nb)]
    tbias = rows[0] if nb == 1 else jnp.concatenate(rows, axis=0)   # (tm, Wp) f32

    # linear_1 + linear_2 (folded):  h = act @ (W1 @ W2_emb) + tbias
    h = jnp.dot(act_ref[...], w12_ref[...],
                preferred_element_type=jnp.float32) + tbias
    # SiLU — sigmoid's exp runs on the EUP slot, essentially free next to MXU work
    h = h * jax.nn.sigmoid(h)
    # linear_3
    out = jnp.dot(h.astype(w3_ref.dtype), w3_ref[...],
                  preferred_element_type=jnp.float32) + b3_ref[...]
    out_ref[...] = out.astype(out_ref.dtype)


def action_encoder_pallas(action, time_emb, params, *,
                          block_rows=512, compute_dtype=jnp.bfloat16,
                          out_dtype=None):
    """action: (B, S, A); time_emb: (B, W) or None; params from init_params.

    compute_dtype: dtype fed to the MXU (bf16 by default; accumulation stays f32).
    out_dtype:     output dtype (defaults to action.dtype).
    """
    B, S, A = action.shape
    W = params["w1"].shape[1]
    out_dtype = jnp.dtype(out_dtype) if out_dtype is not None else action.dtype
    cdt = jnp.dtype(compute_dtype)
    f32 = jnp.float32
    hi = jax.lax.Precision.HIGHEST

    # ---- tiling: row tiles are whole batches so the per-batch time bias can be
    #      broadcast inside the kernel instead of streamed per-row ------------
    A_pad = _round_up(A, 128)
    W_pad = _round_up(W, 128)
    step = 8 // math.gcd(S, 8)                 # nb must be a multiple of step
    nb_budget = max(step, (block_rows // S) // step * step)
    B_step = _round_up(B, step)
    nb = min(nb_budget, B_step)
    if B_step >= 2 * step:
        # prefer >= 2 row tiles so v7x's two TensorCores both get work
        nb = min(nb, _round_up((B_step + 1) // 2, step))
    B_pad = _round_up(B, nb)                   # batches, padded to a tile multiple
    n_tiles = B_pad // nb
    tm = nb * S                                # rows per tile, multiple of 8
    M = B * S
    M_pad = B_pad * S

    # ---- hoist the time half of linear_2 and fold linear_1 into its emb half --
    w2e_f32 = params["w2_emb"].astype(f32)
    w12 = jnp.matmul(params["w1"].astype(f32), w2e_f32, precision=hi)       # (A, W)
    fold_b = jnp.matmul(params["b1"].astype(f32), w2e_f32,
                        precision=hi) + params["b2"].astype(f32)            # (W,)
    if time_emb is not None:
        tbias = jnp.matmul(time_emb.astype(f32), params["w2_time"].astype(f32),
                           precision=hi) + fold_b                           # (B, W)
    else:
        # torch.zeros_like(emb) path: the time term vanishes, only biases remain
        tbias = jnp.broadcast_to(fold_b, (B, W))
    # Resident per-batch bias, f32, padded to an (8,128)-friendly slab (tiny).
    B_tb = _round_up(B_pad, 8)
    tbias = jnp.pad(tbias.astype(f32), ((0, B_tb - B), (0, W_pad - W)))

    # ---- pad to lane/sublane friendly sizes; cast BEFORE padding (no f32 temps)
    act = jnp.pad(action.reshape(M, A).astype(cdt),
                  ((0, M_pad - M), (0, A_pad - A)))
    w12 = jnp.pad(w12.astype(cdt), ((0, A_pad - A), (0, W_pad - W)))
    w3 = jnp.pad(params["w3"].astype(cdt), ((0, W_pad - W), (0, W_pad - W)))
    b3 = jnp.pad(params["b3"].astype(f32), (0, W_pad - W)).reshape(1, W_pad)

    def _rows(i):       # row-tiled operands
        return (i, 0)

    def _const(i):      # resident operands (same block every grid step)
        return (0, 0)

    grid_spec = pltpu.PrefetchScalarGridSpec(
        num_scalar_prefetch=0,
        grid=(n_tiles,),
        in_specs=[
            pl.BlockSpec((tm, A_pad), _rows),        # flattened action rows
            pl.BlockSpec((B_tb, W_pad), _const),     # per-batch hoisted bias
            pl.BlockSpec((A_pad, W_pad), _const),    # W12 = W1 @ W2_emb
            pl.BlockSpec((W_pad, W_pad), _const),    # W3
            pl.BlockSpec((1, W_pad), _const),        # b3
        ],
        out_specs=pl.BlockSpec((tm, W_pad), _rows),
    )

    # Advisory cost hint so XLA schedules/overlaps this custom call sensibly.
    csz = cdt.itemsize
    osz = jnp.dtype(out_dtype).itemsize
    flops = 2 * M_pad * W_pad * (A_pad + W_pad) + 5 * M_pad * W_pad
    bytes_accessed = (M_pad * A_pad * csz + B_tb * W_pad * 4
                      + (A_pad + W_pad) * W_pad * csz + W_pad * 4
                      + M_pad * W_pad * osz)
    cost = pl.CostEstimate(flops=int(flops),
                           transcendentals=int(M_pad * W_pad),
                           bytes_accessed=int(bytes_accessed))

    # Explicit scoped-VMEM budget: double-buffered row tiles + resident
    # weights/bias + f32 intermediates, with headroom.  Floor 32 MiB (raises
    # v5e's 16 MiB default), cap 48 MiB so the config stays legal on v7x's
    # 64 MiB physical VMEM.
    vmem_est = (2 * tm * A_pad * csz                 # action tile (x2 buffers)
                + 2 * tm * W_pad * osz               # output tile (x2 buffers)
                + 2 * (A_pad + W_pad) * W_pad * csz  # W12 + W3 (x2 buffers)
                + 2 * (B_tb + 1) * W_pad * 4         # tbias + b3
                + 4 * tm * W_pad * 4)                # f32 intermediates in-kernel
    vmem_limit = int(min(max(1.5 * vmem_est + (2 << 20), 32 << 20), 48 << 20))

    out = pl.pallas_call(
        partial(_action_encoder_kernel, nb, S),
        out_shape=jax.ShapeDtypeStruct((M_pad, W_pad), out_dtype),
        grid_spec=grid_spec,
        compiler_params=pltpu.CompilerParams(
            # row tiles are independent -> split across TensorCores (v7x)
            dimension_semantics=("parallel",),
            vmem_limit_bytes=vmem_limit),
        cost_estimate=cost,
    )(act, tbias, w12, w3, b3)

    return out[:M, :W].reshape(B, S, W)


def init_params(key, action_dim, width):
    """nn.Linear-style init (uniform +/- 1/sqrt(fan_in)), weights stored [in, out]."""
    ks = jax.random.split(key, 6)

    def lin(kw, kb, fan_in, fan_out):
        bound = 1.0 / math.sqrt(fan_in)
        w = jax.random.uniform(kw, (fan_in, fan_out), jnp.float32, -bound, bound)
        b = jax.random.uniform(kb, (fan_out,), jnp.float32, -bound, bound)
        return w, b

    w1, b1 = lin(ks[0], ks[1], action_dim, width)
    w2, b2 = lin(ks[2], ks[3], 2 * width, width)
    w3, b3 = lin(ks[4], ks[5], width, width)
    return {
        "w1": w1, "b1": b1,
        # split linear_2's 2*width input dim: first `width` rows multiply the
        # time embedding, last `width` rows multiply linear_1's output
        # (matches torch.cat([time_emb_full, emb], dim=-1)).
        "w2_time": w2[:width], "w2_emb": w2[width:], "b2": b2,
        "w3": w3, "b3": b3,
    }


def action_encoder_ref(action, time_emb, params):
    """Plain-JAX reference mirroring the PyTorch forward (full f32 precision)."""
    hi = jax.lax.Precision.HIGHEST
    emb = jnp.matmul(action, params["w1"], precision=hi) + params["b1"]
    if time_emb is not None:
        t_full = jnp.broadcast_to(
            time_emb[:, None, :],
            (action.shape[0], action.shape[1], time_emb.shape[-1]))
    else:
        t_full = jnp.zeros_like(emb)
    w2 = jnp.concatenate([params["w2_time"], params["w2_emb"]], axis=0)
    h = jnp.matmul(jnp.concatenate([t_full, emb], axis=-1), w2,
                   precision=hi) + params["b2"]
    h = jax.nn.silu(h)
    return jnp.matmul(h, params["w3"], precision=hi) + params["b3"]


if __name__ == "__main__":
    key = jax.random.PRNGKey(0)
    k_act, k_time, k_params, k_act2, k_time2 = jax.random.split(key, 5)

    # Small shapes matching the module's forward: (B, S, A) action, (B, W) time.
    B, S, A, W = 2, 8, 4, 32
    action = jax.random.normal(k_act, (B, S, A), jnp.float32)
    time_emb = jax.random.normal(k_time, (B, W), jnp.float32)
    params = init_params(k_params, A, W)
    ref = action_encoder_ref(action, time_emb, params)

    # 1) f32 compute path, with time embedding (strict; fold only reassociates)
    out = jax.block_until_ready(
        action_encoder_pallas(action, time_emb, params, compute_dtype=jnp.float32))
    assert out.shape == (B, S, W)
    assert jnp.allclose(out, ref, atol=5e-4, rtol=5e-4), "mismatch (f32 time_emb path)"

    # 2) f32 compute, time_emb=None branch
    out_none = jax.block_until_ready(
        action_encoder_pallas(action, None, params, compute_dtype=jnp.float32))
    ref_none = action_encoder_ref(action, None, params)
    assert jnp.allclose(out_none, ref_none, atol=5e-4, rtol=5e-4), "mismatch (None path)"

    # 3) production default: bf16 compute, f32 accumulation (looser tolerance)
    out_bf = jax.block_until_ready(action_encoder_pallas(action, time_emb, params))
    assert out_bf.shape == (B, S, W)
    assert jnp.allclose(out_bf, ref, atol=5e-2, rtol=5e-2), "mismatch (bf16 path)"

    # 4) multi-tile grid path: several batches, S not a multiple of 8.
    B2, S2 = 4, 100                      # -> 2 row tiles of 2 batches (200 rows) each
    action2 = jax.random.normal(k_act2, (B2, S2, A), jnp.float32)
    time_emb2 = jax.random.normal(k_time2, (B2, W), jnp.float32)
    out2 = jax.block_until_ready(
        action_encoder_pallas(action2, time_emb2, params, compute_dtype=jnp.float32))
    ref2 = action_encoder_ref(action2, time_emb2, params)
    assert out2.shape == (B2, S2, W)
    assert jnp.allclose(out2, ref2, atol=5e-4, rtol=5e-4), "mismatch (tiled path)"

    print("KERNEL_OK")
</pallas_src>

<mosaic_0001>
module attributes {stable_mosaic.version = 11 : i64} {
  func.func @_action_encoder_kernel(%arg0: i32, %arg1: memref<8x128xf32, #tpu.memory_space<vmem>>, %arg2: memref<8x128xf32, #tpu.memory_space<vmem>>, %arg3: memref<128x128xf32, #tpu.memory_space<vmem>>, %arg4: memref<128x128xf32, #tpu.memory_space<vmem>>, %arg5: memref<1x128xf32, #tpu.memory_space<vmem>>, %arg6: memref<8x128xf32, #tpu.memory_space<vmem>>) attributes {dimension_semantics = [#tpu.dimension_semantics<parallel>], iteration_bounds = array<i64: 2>, scalar_prefetch = 0 : i64, scratch_operands = 0 : i64, tpu.core_type = #tpu.core_type<tc>, window_params = [{transform_indices = @transform_0, window_bounds = array<i64: 8, 128>}, {pipeline_mode = #tpu.pipeline_mode<synchronous>, transform_indices = @transform_1, window_bounds = array<i64: 8, 128>}, {pipeline_mode = #tpu.pipeline_mode<synchronous>, transform_indices = @transform_2, window_bounds = array<i64: 128, 128>}, {pipeline_mode = #tpu.pipeline_mode<synchronous>, transform_indices = @transform_3, window_bounds = array<i64: 128, 128>}, {pipeline_mode = #tpu.pipeline_mode<synchronous>, transform_indices = @transform_4, window_bounds = array<i64: 1, 128>}, {transform_indices = @transform_5, window_bounds = array<i64: 8, 128>}]} {
    %c1_i32 = arith.constant 1 : i32
    %0 = arith.muli %arg0, %c1_i32 : i32
    %c0_i32 = arith.constant 0 : i32
    %1 = arith.addi %0, %c0_i32 : i32
    %2 = arith.index_cast %1 : i32 to index
    %c0 = arith.constant 0 : index
    %3 = vector.load %arg2[%2, %c0] : memref<8x128xf32, #tpu.memory_space<vmem>>, vector<1x128xf32>
    %4 = vector.shape_cast %3 : vector<1x128xf32> to vector<1x128xf32>
    %5 = vector.broadcast %4 : vector<1x128xf32> to vector<8x128xf32>
    %c0_0 = arith.constant 0 : index
    %c0_1 = arith.constant 0 : index
    %6 = vector.load %arg1[%c0_0, %c0_1] : memref<8x128xf32, #tpu.memory_space<vmem>>, vector<8x128xf32>
    %c0_2 = arith.constant 0 : index
    %c0_3 = arith.constant 0 : index
    %7 = vector.load %arg3[%c0_2, %c0_3] : memref<128x128xf32, #tpu.memory_space<vmem>>, vector<128x128xf32>
    %cst = arith.constant dense<0.000000e+00> : vector<8x128xf32>
    %8 = tpu.matmul %6, %7, %cst {dimension_numbers = #tpu.dot_dimension_numbers<[1], [0], [0], [1], [0, 0, 1, 1], [], []>} : vector<8x128xf32>, vector<128x128xf32>, vector<8x128xf32> -> vector<8x128xf32>
    %9 = arith.addf %8, %5 : vector<8x128xf32>
    %10 = arith.negf %9 : vector<8x128xf32>
    %11 = math.exp %10 : vector<8x128xf32>
    %cst_4 = arith.constant 1.000000e+00 : f32
    %12 = vector.broadcast %cst_4 : f32 to vector<8x128xf32>
    %13 = arith.addf %12, %11 : vector<8x128xf32>
    %14 = arith.divf %12, %13 : vector<8x128xf32>
    %15 = arith.mulf %9, %14 : vector<8x128xf32>
    %c0_5 = arith.constant 0 : index
    %c0_6 = arith.constant 0 : index
    %16 = vector.load %arg4[%c0_5, %c0_6] : memref<128x128xf32, #tpu.memory_space<vmem>>, vector<128x128xf32>
    %cst_7 = arith.constant dense<0.000000e+00> : vector<8x128xf32>
    %17 = tpu.matmul %15, %16, %cst_7 {dimension_numbers = #tpu.dot_dimension_numbers<[1], [0], [0], [1], [0, 0, 1, 1], [], []>} : vector<8x128xf32>, vector<128x128xf32>, vector<8x128xf32> -> vector<8x128xf32>
    %c0_8 = arith.constant 0 : index
    %c0_9 = arith.constant 0 : index
    %18 = vector.load %arg5[%c0_8, %c0_9] : memref<1x128xf32, #tpu.memory_space<vmem>>, vector<1x128xf32>
    %19 = vector.broadcast %18 : vector<1x128xf32> to vector<8x128xf32>
    %20 = arith.addf %17, %19 : vector<8x128xf32>
    %c0_10 = arith.constant 0 : index
    %c0_11 = arith.constant 0 : index
    %21 = vector.load %arg6[%c0_10, %c0_11] : memref<8x128xf32, #tpu.memory_space<vmem>>, vector<8x128xf32>
    tpu.vector_store %arg6[%c0_10, %c0_11], %20 {strides = array<i32>} : memref<8x128xf32, #tpu.memory_space<vmem>>, vector<8x128xf32>,
    return
  }
  func.func @transform_0(%arg0: i32) -> (i32, i32) {
    %c0_i32 = arith.constant 0 : i32
    %c0_i32_0 = arith.constant 0 : i32
    return %arg0, %c0_i32 : i32, i32
  }
  func.func @transform_1(%arg0: i32) -> (i32, i32) {
    %c0_i32 = arith.constant 0 : i32
    %c0_i32_0 = arith.constant 0 : i32
    %c0_i32_1 = arith.constant 0 : i32
    return %c0_i32, %c0_i32_0 : i32, i32
  }
  func.func @transform_2(%arg0: i32) -> (i32, i32) {
    %c0_i32 = arith.constant 0 : i32
    %c0_i32_0 = arith.constant 0 : i32
    %c0_i32_1 = arith.constant 0 : i32
    return %c0_i32, %c0_i32_0 : i32, i32
  }
  func.func @transform_3(%arg0: i32) -> (i32, i32) {
    %c0_i32 = arith.constant 0 : i32
    %c0_i32_0 = arith.constant 0 : i32
    %c0_i32_1 = arith.constant 0 : i32
    return %c0_i32, %c0_i32_0 : i32, i32
  }
  func.func @transform_4(%arg0: i32) -> (i32, i32) {
    %c0_i32 = arith.constant 0 : i32
    %c0_i32_0 = arith.constant 0 : i32
    %c0_i32_1 = arith.constant 0 : i32
    return %c0_i32, %c0_i32_0 : i32, i32
  }
  func.func @transform_5(%arg0: i32) -> (i32, i32) {
    %c0_i32 = arith.constant 0 : i32
    %c0_i32_0 = arith.constant 0 : i32
    return %arg0, %c0_i32 : i32, i32
  }
}

</mosaic_0001>

<bundles_post_ra>
// kernel: tpu_custom_call.1
= control target key start
LH: loop header
LB: loop body
LE: loop exit
PB: predicated region body
PF: predicated region fallthrough
CT: control target
= control target key end

     0   :  { %10 = vsyncpa [#allocation3], 0  ;;  %s1358_s0 = inlined_call_operand.hbm [shape: f32[16,128], index: 0, kind: input, shape index: {}]   ;;  %s1359_s1 = inlined_call_operand.hbm [shape: f32[8,128], index: 1, kind: input, shape index: {}]   ;;  %s1360_s2 = inlined_call_operand.hbm [shape: f32[128,128], index: 2, kind: input, shape index: {}]   ;;  %s1361_s3 = inlined_call_operand.hbm [shape: f32[128,128], index: 3, kind: input, shape index: {}]   ;;  %s1362_s4 = inlined_call_operand.vmem [shape: f32[1,128], index: 4, kind: input, shape index: {}]   ;;  %s1363_s5 = inlined_call_operand.hbm [shape: f32[16,128], index: 5, kind: output, shape index: {}]  }
   0x1   :  { %12 = vsyncpa [#allocation3 + $0x1], 0 }
   0x2   :  { %13 = vsyncpa [#allocation6], 0 }
   0x3   :  { %14 = vsyncpa [#allocation9], 0 }
   0x4   :  { %15 = vsyncpa [#allocation4], 0 }
   0x5   :  { %17 = vsyncpa [#allocation4 + $0x1], 0  ;;  %s1084_s18 = smov 0   ;;  %s1086_s19 = smov 0  }
   0x6   :  { %s1088_s20 = smov 0   ;;  %s1090_s21 = smov 0  }
   0x7 LB: > { %s1105_s22 = sadd.s32 4294967295, %s1042_s21   ;;  %s590_s23 = sadd.s32 4294967294, %s1042_s21   ;;  %s1042_s21 = sphi %s1090_s21, %s1386_s21   ;;  %s1038_s20 = sphi %s1088_s20, %s1385_s20   ;;  %s1034_s19 = sphi %s1086_s19, %s1384_s19   ;;  %s1030_s18 = sphi %s1084_s18, %s1383_s18  }
   0x8   : > { %p43_p0 = scmp.ne.s32.totalorder %s1034_s19, %s1030_s18  ;;  %p1364_p1 = scmp.eq.s32.totalorder %s1105_s22, 0 }
   0x9   : > { %p157_p3 = scmp.eq.s32.totalorder %s590_s23, 1  ;;  %p591_p5 = scmp.ge.s32.totalorder %s1042_s21, 1 }
   0xa   : > { %p1114_p4 = por %p1364_p1, %p43_p0  ;;  %p164_p7 = scmp.lt.s32.totalorder %s1042_s21, 3 }
   0xb   : > { %p1119_p6 = por %p157_p3, %p43_p0  ;;  %s1044_s27 = smov [#allocation5]  }
   0xc   : > { %s1367_s24 = scalar_select %p1114_p4, 1, 0 }
   0xd   : > { %s1368_s25 = scalar_select %p1119_p6, 1, 0 }
   0xe   : > { %p1124_p8 = pnand %p591_p5, %p164_p7  ;;  %s177_s28 = sshll.u32 %s1044_s27, 4  ;;  %s178_s28 = int_to_ptr.vmem [resolvable:$true] %s177_s28 }
   0xf   : > { %s1045_s29 = smov [#allocation7]   ;;  %s1046_s7 = smov [#allocation8]  }
  0x10   : > { %s1369_s26 = scalar_select %p1124_p8, 1, 0 }
  0x11   : > { %p784_p10 = pneg %p1124_p8  ;;  %s187_s30 = sshll.u32 %s1045_s29, 4  ;;  %s1137_s30 = int_to_ptr.vmem [resolvable:$true] %s187_s30 }
  0x12   : > { %s1139_s8 = sshll.u32 %s1046_s7, 4  ;;  %s854_s11 = scalar_lea.hbm %s1359_s1, 128  ;;  %s201_s8 = int_to_ptr.vmem [resolvable:$true] %s1139_s8 }
  0x13   : > { %p1133_p11 = pnand %p784_p10, %p1364_p1  ;;  %p855_p12 = scmp.ne.s32.totalorder %s1359_s1, %s854_s11 }
  0x14   : > { %p861_p5 = scmp.lt.u32.totalorder %s854_s11, %s1359_s1 }
  0x15   : > { %p1149_p13 = pneg %p1133_p11 }
  0x17   : > { %p857_p0 = pnand %p1149_p13, %p855_p12 }
  0x19   : > { %p858_p3 = pneg %p857_p0 }
  0x1b   : > { %p863_p7 = pnand %p861_p5, %p858_p3 }
  0x1d   : > { %866 = shalt.err (!%p863_p7)
}
  0x1e   : > { %s867_s17 = scalar_lea.vmem %s178_s28, 128  ;;  %p875_p2 = scmp.lt.s32.totalorder %s178_s28, %s178_s28 }
  0x1f   : > { %p868_p10 = scmp.ne.s32.totalorder %s178_s28, %s867_s17  ;;  %p876_p6 = scmp.lt.s32.totalorder %s867_s17, %s867_s17 }
  0x21   : > { %p870_p9 = pnand %p868_p10, %p1149_p13  ;;  %p877_p4 = por %p876_p6, %p875_p2 }
  0x23   : > { %p871_p1 = pneg %p870_p9 }
  0x25   : > { %p878_p8 = pnand %p877_p4, %p871_p1 }
  0x27   : > { %881 = shalt.err (!%p878_p8)
}
  0x28   : > { %787 = dma.hbm_to_vmem [thread:$0]  (!%p1133_p11), %s1359_s1, 128, %s178_s28, [#allocation6]  }
  0x29   : > { %s882_s9 = scalar_lea.hbm %s1360_s2, 2048 }
  0x2a   : > { %p883_p9 = scmp.ne.s32.totalorder %s1360_s2, %s882_s9  ;;  %p889_p1 = scmp.lt.u32.totalorder %s882_s9, %s1360_s2 }
  0x2c   : > { %p885_p12 = pnand %p883_p9, %p1149_p13 }
  0x2e   : > { %p886_p2 = pneg %p885_p12 }
  0x30   : > { %p891_p4 = pnand %p889_p1, %p886_p2 }
  0x32   : > { %894 = shalt.err (!%p891_p4)
}
  0x33   : > { %s895_s28 = scalar_lea.vmem %s1137_s30, 2048  ;;  %p903_p3 = scmp.lt.s32.totalorder %s1137_s30, %s1137_s30 }
  0x34   : > { %p896_p6 = scmp.ne.s32.totalorder %s1137_s30, %s895_s28  ;;  %p904_p5 = scmp.lt.s32.totalorder %s895_s28, %s895_s28 }
  0x36   : > { %p898_p8 = pnand %p896_p6, %p1149_p13  ;;  %p905_p7 = por %p904_p5, %p903_p3 }
  0x38   : > { %p899_p0 = pneg %p898_p8 }
  0x3a   : > { %p906_p10 = pnand %p905_p7, %p899_p0 }
  0x3c   : > { %909 = shalt.err (!%p906_p10)
}
  0x3d   : > { %s1047_s15 = smov 128   ;;  %s1048_s16 = smov 8  }
  0x3e   : > { %790 = dma.hbm_to_vmem [thread:$0]  (!%p1133_p11), %s1360_s2, 2048, %s1137_s30, [#allocation6], %s1047_s15, %s1047_s15, %s1048_s16  }
  0x3f   : > { %s910_s7 = scalar_lea.hbm %s1361_s3, 2048 }
  0x40   : > { %p911_p9 = scmp.ne.s32.totalorder %s1361_s3, %s910_s7  ;;  %p917_p1 = scmp.lt.u32.totalorder %s910_s7, %s1361_s3 }
  0x42   : > { %p913_p12 = pnand %p911_p9, %p1149_p13 }
  0x44   : > { %p914_p2 = pneg %p913_p12 }
  0x46   : > { %p919_p4 = pnand %p917_p1, %p914_p2 }
  0x48   : > { %922 = shalt.err (!%p919_p4)
}
  0x49   : > { %s923_s13 = scalar_lea.vmem %s201_s8, 2048  ;;  %p931_p3 = scmp.lt.s32.totalorder %s201_s8, %s201_s8 }
  0x4a   : > { %p924_p6 = scmp.ne.s32.totalorder %s201_s8, %s923_s13  ;;  %p932_p5 = scmp.lt.s32.totalorder %s923_s13, %s923_s13 }
  0x4c   : > { %p926_p8 = pnand %p924_p6, %p1149_p13  ;;  %p933_p7 = por %p932_p5, %p931_p3 }
  0x4e   : > { %p927_p0 = pneg %p926_p8 }
  0x50   : > { %p934_p10 = pnand %p933_p7, %p927_p0 }
  0x52   : > { %937 = shalt.err (!%p934_p10)
}
  0x53   : > { %793 = dma.hbm_to_vmem [thread:$0]  (!%p1133_p11), %s1361_s3, 2048, %s201_s8, [#allocation9], %s1047_s15, %s1047_s15, %s1048_s16  }
  0x54   : > { %s1208_s14 = sadd.s32 1, %s1042_s21   ;;  %s30_s6 = sadd.s32 1, %s1038_s20 }
  0x55   : > { %s27_s17 = ssub.s32 %s1042_s21, %s1208_s14  ;;  %p37_p9 = scmp.ne.s32.totalorder %s1038_s20, %s1034_s19 }
  0x56   : > { %p28_p13 = scmp.eq.s32.totalorder %s27_s17, 0  ;;  %p38_p12 = scmp.eq.s32.totalorder %s1042_s21, 0 }
  0x57   : > { %p805_p2 = scmp.lt.s32.totalorder %s1042_s21, 2  ;;  %p1372_p4 = scmp.eq.s32.totalorder %s1105_s22, 1 }
  0x58   : > { %s1218_s23 = scalar_select %p28_p13, %s1038_s20, %s30_s6  }
  0x59   : > { %p39_p1 = por %p38_p12, %p37_p9  ;;  %p1222_p6 = por %p1372_p4, %p37_p9 }
  0x5a   : > { %s217_s29 = sand.u32 1, %s1038_s20   ;;  %s597_s7 = sshll.u32 %s1042_s21, 7 }
  0x5b   : > { %s596_s8 = sshll.u32 %s217_s29, 3  ;;  %s1231_s9 = scalar_lea.hbm %s1358_s0, %s597_s7 }
  0x5c   : > { %s221_s10 = scalar_lea.vmem [#allocation2], %s596_s8  ;;  %p1233_p11 = pnand %p805_p2, %p39_p1 }
  0x5d   : > { %s228_s11 = sshll.u32 %s221_s10, 4  ;;  %s218_s13 = scalar_lea.sflag [#allocation3], %s217_s29  ;;  %s1237_s11 = int_to_ptr.vmem [resolvable:$true] %s228_s11 }
  0x5e   : > { %s938_s30 = scalar_lea.hbm %s1231_s9, 128  ;;  %p940_p0 = pneg %p1233_p11 }
  0x5f   : > { %p939_p8 = scmp.ne.s32.totalorder %s1231_s9, %s938_s30  ;;  %s943_s6 = scalar_lea.hbm %s1358_s0, 256 }
  0x60   : > { %p944_p7 = scmp.lt.u32.totalorder %s1231_s9, %s1358_s0  ;;  %p945_p10 = scmp.lt.u32.totalorder %s943_s6, %s938_s30 }
  0x61   : > { %p941_p3 = pnand %p940_p0, %p939_p8  ;;  %p947_p9 = scmp.lt.u32.totalorder %s938_s30, %s1231_s9 }
  0x62   : > { %p946_p13 = por %p945_p10, %p944_p7 }
  0x63   : > { %p942_p5 = pneg %p941_p3 }
  0x64   : > { %p948_p12 = por %p947_p9, %p946_p13 }
  0x66   : > { %p949_p2 = pnand %p948_p12, %p942_p5 }
  0x68   : > { %952 = shalt.err (!%p949_p2)
}
  0x69   : > { %s953_s29 = scalar_lea.vmem %s1237_s11, 128  ;;  %s1049_s15 = smov [#allocation2]  }
  0x6a   : > { %p954_p1 = scmp.ne.s32.totalorder %s1237_s11, %s953_s29  ;;  %s958_s16 = sshll.u32 %s1049_s15, 4  ;;  %s959_s16 = int_to_ptr.vmem [resolvable:$false] %s958_s16 }
  0x6b   : > { %s960_s10 = scalar_lea.vmem %s959_s16, 256  ;;  %p961_p3 = scmp.lt.s32.totalorder %s1237_s11, %s959_s16 }
  0x6c   : > { %p956_p4 = pnand %p954_p1, %p940_p0  ;;  %p962_p7 = scmp.lt.s32.totalorder %s960_s10, %s953_s29 }
  0x6e   : > { %p957_p8 = pneg %p956_p4  ;;  %p963_p10 = por %p962_p7, %p961_p3 }
  0x70   : > { %p964_p13 = pnand %p963_p10, %p957_p8 }
  0x72   : > { %967 = shalt.err (!%p964_p13)
}
  0x73   : > { %797 = dma.hbm_to_vmem [thread:$0]  (!%p1233_p11), %s1231_s9, 128, %s1237_s11, %s218_s13  }
  0x74   : > { %p1375_p5 = scmp.ne.s32.totalorder %s1369_s26, 0 }
  0x75   : > { %s1267_s30 = sand.u32 (!%p1375_p5), 1, %s1034_s19   ;;  %p1376_p0 = scmp.ne.s32.totalorder (!%p1375_p5), %s1367_s24, 0 }
  0x76   : > { %237 = sbr.rel (%p1375_p5) target bundleno = 638 (0x27e), region = 40  ;;  %s599_s28 = sshll.u32 (!%p1375_p5), %s1267_s30, 3 }
  0x77   : > { %s240_s17 = scalar_lea.sflag (!%p1375_p5), [#allocation3], %s1267_s30  ;;  %s1273_s6 = scalar_lea.vmem (!%p1375_p5), [#allocation2], %s599_s28 }
  0x7d   : > { %1013 = dma.done.wait (%p1376_p0), %s240_s17, 128  }
  0x7e   : > { %1015 = vsyncadd (%p1376_p0), %s240_s17, 4294967168  ;;  %p1377_p11 = scmp.eq.s32.totalorder %s1105_s22, 0 }
  0x80   : > { %1017 = dma.done.wait (%p1377_p11), [#allocation6], 2176   ;;  %p1378_p9 = pmov %p1377_p11 }
  0x82   : > { %1019 = vsyncadd (%p1378_p9), [#allocation6], 4294965120  ;;  %p1379_p12 = pmov %p1378_p9 }
  0x83   : > { %p1380_p2 = pmov %p1378_p9 }
  0x84   : > { %1021 = dma.done.wait (%p1379_p12), [#allocation9], 2048  }
  0x85   : > { %1023 = vsyncadd (%p1380_p2), [#allocation9], 4294965248  ;;  %v1050_v0 = vmov 0.0|0.0   ;;  %vm1051_vm0 = vmmov 0   ;;  %v1052_v1 = vmov 0.0   ;;  %v289_v2 = vld [vmem:[#allocation7] sm:$0xff] }
  0x86   : > { %720 = vmatprep.subr.bf16.mxu0 %v1050_v0  ;;  %682 = vmatprep.mubr.msk.f32.mxu0 %vm1051_vm0, %v1052_v1  ;;  %v290_v3 = vld [vmem:[#allocation7 + $0x8] sm:$0xff]  ;;  %v291_v4 = vld [vmem:[#allocation7 + $0x10] sm:$0xff]  ;;  %v292_v6 = vld [vmem:[#allocation7 + $0x18] sm:$0xff]  ;;  %s612_s24 = scalar_lea.vmem [#allocation5], %s1042_s21  ;;  %s609_s11 = sshll.u32 %s1105_s22, 7 }
  0x87   : > { %744 = vmatprep.subr.bf16.mxu1 %v1050_v0  ;;  %717 = vmatprep.mubr.msk.f32.mxu1 %vm1051_vm0, %v1052_v1  ;;  %v721_v5 = vpack.c.bf16 %v290_v3, %v289_v2  ;;  %v724_v7 = vpack.c.bf16 %v292_v6, %v291_v4  ;;  %v293_v8 = vld [vmem:[#allocation7 + $0x20] sm:$0xff]  ;;  %v294_v9 = vld [vmem:[#allocation7 + $0x28] sm:$0xff]  ;;  %v295_v11 = vld [vmem:[#allocation7 + $0x30] sm:$0xff]  ;;  %s281_s12 = scalar_lea.vmem [#allocation10], %s599_s28  ;;  %s1314_s29 = scalar_lea.hbm %s1363_s5, %s609_s11 }
  0x88   : > { %v727_v10 = vpack.c.bf16 %v294_v9, %v293_v8  ;;  %v296_v12 = vld [vmem:[#allocation7 + $0x38] sm:$0xff]  ;;  %v297_v14 = vld [vmem:[#allocation7 + $0x40] sm:$0xff]  ;;  %v298_v15 = vld [vmem:[#allocation7 + $0x48] sm:$0xff]  ;;  %s490_s13 = sshll.u32 %s281_s12, 4  ;;  %s477_s15 = scalar_lea.sflag [#allocation4], %s1267_s30  ;;  %s1316_s13 = int_to_ptr.vmem [resolvable:$true] %s490_s13 }
  0x89   : > { %722 = vmatpush3.bf16.msra.mxu0 %v721_v5  ;;  %v730_v13 = vpack.c.bf16 %v296_v12, %v295_v11  ;;  %v733_v16 = vpack.c.bf16 %v298_v15, %v297_v14  ;;  %v299_v17 = vld [vmem:[#allocation7 + $0x50] sm:$0xff]  ;;  %v300_v18 = vld [vmem:[#allocation7 + $0x58] sm:$0xff]  ;;  %v301_v20 = vld [vmem:[#allocation7 + $0x60] sm:$0xff]  ;;  %s968_s16 = scalar_lea.vmem %s1316_s13, 128  ;;  %s1053_s22 = smov [#allocation10]  }
  0x8a   : > { %723 = vmatprep.subr.bf16.mxu0 %v1050_v0  ;;  %v736_v19 = vpack.c.bf16 %v300_v18, %v299_v17  ;;  %v302_v21 = vld [vmem:[#allocation7 + $0x68] sm:$0xff]  ;;  %v303_v23 = vld [vmem:[#allocation7 + $0x70] sm:$0xff]  ;;  %v304_v24 = vld [vmem:[#allocation7 + $0x78] sm:$0xff]  ;;  %p969_p1 = scmp.ne.s32.totalorder %s1316_s13, %s968_s16  ;;  %s972_s10 = sshll.u32 %s1053_s22, 4  ;;  %s973_s10 = int_to_ptr.vmem [resolvable:$false] %s972_s10 }
  0x8b   : > { %v739_v22 = vpack.c.bf16 %v302_v21, %v301_v20  ;;  %v742_v25 = vpack.c.bf16 %v304_v24, %v303_v23  ;;  %v288_v26 = vld [vmem:[%s1273_s6] sm:$0xff]  ;;  %v382_v27 = vld [vmem:[#allocation8] sm:$0xff]  ;;  %v385_v31 = vld [vmem:[#allocation8 + $0x18] sm:$0xff]  ;;  %s974_s28 = scalar_lea.vmem %s973_s10, 256  ;;  %p975_p3 = scmp.lt.s32.totalorder %s1316_s13, %s973_s10 }
  0x8c   : > { %v383_v28 = vld [vmem:[#allocation8 + $0x8] sm:$0xff]  ;;  %v384_v30 = vld [vmem:[#allocation8 + $0x10] sm:$0xff]  ;;  %v386_v33 = vld [vmem:[#allocation8 + $0x20] sm:$0xff]  ;;  %p970_p4 = pnand %p969_p1, %p1222_p6  ;;  %p976_p7 = scmp.lt.s32.totalorder %s974_s28, %s968_s16 }
  0x8d   : > { %725 = vmatpush3.bf16.msra.mxu0 %v724_v7  ;;  %v745_v29 = vpack.c.bf16 %v383_v28, %v382_v27  ;;  %v748_v32 = vpack.c.bf16 %v385_v31, %v384_v30  ;;  %v387_v34 = vld [vmem:[#allocation8 + $0x28] sm:$0xff]  ;;  %v388_v36 = vld [vmem:[#allocation8 + $0x30] sm:$0xff]  ;;  %v389_v37 = vld [vmem:[#allocation8 + $0x38] sm:$0xff] }
  0x8e   : > { %726 = vmatprep.subr.bf16.mxu0 %v1050_v0  ;;  %v751_v35 = vpack.c.bf16 %v387_v34, %v386_v33  ;;  %v754_v38 = vpack.c.bf16 %v389_v37, %v388_v36  ;;  %v390_v39 = vld [vmem:[#allocation8 + $0x40] sm:$0xff]  ;;  %v391_v40 = vld [vmem:[#allocation8 + $0x48] sm:$0xff]  ;;  %v392_v42 = vld [vmem:[#allocation8 + $0x50] sm:$0xff]  ;;  %p971_p8 = pneg %p970_p4  ;;  %p977_p10 = por %p976_p7, %p975_p3 }
  0x8f   : > { %746 = vmatpush3.bf16.msra.mxu1 %v745_v29  ;;  %v757_v41 = vpack.c.bf16 %v391_v40, %v390_v39  ;;  %v393_v43 = vld [vmem:[#allocation8 + $0x58] sm:$0xff]  ;;  %v394_v45 = vld [vmem:[#allocation8 + $0x60] sm:$0xff]  ;;  %v395_v46 = vld [vmem:[#allocation8 + $0x68] sm:$0xff] }
  0x90   : > { %747 = vmatprep.subr.bf16.mxu1 %v1050_v0  ;;  %v760_v44 = vpack.c.bf16 %v393_v43, %v392_v42  ;;  %v763_v47 = vpack.c.bf16 %v395_v46, %v394_v45  ;;  %v396_v48 = vld [vmem:[#allocation8 + $0x70] sm:$0xff]  ;;  %v397_v49 = vld [vmem:[#allocation8 + $0x78] sm:$0xff]  ;;  %v615_v51 = vld [vmem:[%s612_s24 - $0x1] ss:$0 sm:$0xff]  ;;  %p978_p13 = pnand %p977_p10, %p971_p8 }
  0x91   : > { %728 = vmatpush3.bf16.msra.mxu0 %v727_v10  ;;  %v766_v50 = vpack.c.bf16 %v397_v49, %v396_v48  ;;  %v607_v60 = vld [vmem:[%s1362_s4] ss:$0 sm:$0xff] }
  0x92   : > { %729 = vmatprep.subr.bf16.mxu0 %v1050_v0 }
  0x93   : > { %749 = vmatpush3.bf16.msra.mxu1 %v748_v32 }
  0x94   : > { %750 = vmatprep.subr.bf16.mxu1 %v1050_v0 }
  0x95   : > { %731 = vmatpush3.bf16.msra.mxu0 %v730_v13 }
  0x96   : > { %732 = vmatprep.subr.bf16.mxu0 %v1050_v0 }
  0x97   : > { %752 = vmatpush3.bf16.msra.mxu1 %v751_v35 }
  0x98   : > { %753 = vmatprep.subr.bf16.mxu1 %v1050_v0 }
  0x99   : > { %734 = vmatpush3.bf16.msra.mxu0 %v733_v16 }
  0x9a   : > { %735 = vmatprep.subr.bf16.mxu0 %v1050_v0 }
  0x9b   : > { %755 = vmatpush3.bf16.msra.mxu1 %v754_v38 }
  0x9c   : > { %756 = vmatprep.subr.bf16.mxu1 %v1050_v0 }
  0x9d   : > { %737 = vmatpush3.bf16.msra.mxu0 %v736_v19 }
  0x9e   : > { %738 = vmatprep.subr.bf16.mxu0 %v1050_v0 }
  0x9f   : > { %758 = vmatpush3.bf16.msra.mxu1 %v757_v41 }
  0xa0   : > { %759 = vmatprep.subr.bf16.mxu1 %v1050_v0 }
  0xa1   : > { %740 = vmatpush3.bf16.msra.mxu0 %v739_v22 }
  0xa2   : > { %741 = vmatprep.subr.bf16.mxu0 %v1050_v0 }
  0xa3   : > { %761 = vmatpush3.bf16.msra.mxu1 %v760_v44 }
  0xa4   : > { %762 = vmatprep.subr.bf16.mxu1 %v1050_v0 }
  0xa5   : > { %743 = vmatpush3.bf16.msra.mxu0 %v742_v25 }
  0xa7   : > { %764 = vmatpush3.bf16.msra.mxu1 %v763_v47 }
  0xa8   : > { %683 = vmatmul.mubr.f32.vlgmr.msra.gmra.mrb[0].mxu0 %v288_v26  ;;  %765 = vmatprep.subr.bf16.mxu1 %v1050_v0 }
  0xab   : > { %767 = vmatpush3.bf16.msra.mxu1 %v766_v50 }
 0x17b   : > { %v371_v52 = vpop.f32.mrb[0].mxu0 }
 0x17c   : > { %v372_v53 = vadd.f32 %v615_v51, %v371_v52  ;;  %v684_v54 = vpop.f32.mrb[1].mxu0 }
 0x17e   : > { %v606_v55 = vmul.f32 -1.442695, %v372_v53 }
 0x180   : > { %850 = vpow2.f32 %v606_v55 }
 0x18a   : > { %v851_v56 = vpop.eup %850 }
 0x18b   : > { %v378_v57 = vadd.f32 1.0, %v851_v56 }
 0x18d   : > { %852 = vrcp.f32 %v378_v57 }
 0x197   : > { %v853_v58 = vpop.eup %852 }
 0x198   : > { %v381_v59 = vmul.f32 %v853_v58, %v372_v53 }
 0x19a   : > { %718 = vmatmul.mubr.f32.vlgmr.msra.gmra.mrb[0].mxu1 %v381_v59 }
 0x26d   : > { %v471_v61 = vpop.f32.mrb[0].mxu1 }
 0x26e   : > { %v472_v62 = vadd.f32 %v607_v60, %v471_v61  ;;  %v719_v63 = vpop.f32.mrb[1].mxu1 }
 0x270   : > { %475 = vst [vmem:[%s281_s12] sm:$0xff] %v472_v62 }
 0x271   : > { %981 = shalt.err (!%p978_p13)
}
 0x272   : > { %s982_s30 = scalar_lea.hbm %s1314_s29, 128  ;;  %s986_s24 = scalar_lea.hbm %s1363_s5, 256 }
 0x273   : > { %p983_p5 = scmp.ne.s32.totalorder %s1314_s29, %s982_s30  ;;  %p987_p9 = scmp.lt.u32.totalorder %s1314_s29, %s1363_s5 }
 0x274   : > { %p988_p12 = scmp.lt.u32.totalorder %s986_s24, %s982_s30  ;;  %p990_p1 = scmp.lt.u32.totalorder %s982_s30, %s1314_s29 }
 0x275   : > { %p984_p0 = pnand %p983_p5, %p1222_p6 }
 0x276   : > { %p989_p2 = por %p988_p12, %p987_p9 }
 0x277   : > { %p985_p11 = pneg %p984_p0 }
 0x278   : > { %p991_p4 = por %p990_p1, %p989_p2 }
 0x27a   : > { %p992_p8 = pnand %p991_p4, %p985_p11 }
 0x27c   : > { %995 = shalt.err (!%p992_p8)
}
 0x27d   : > { %782 = dma.vmem_to_hbm [thread:$0]  (%p1222_p6), %s1316_s13, 128, %s1314_s29, %s477_s15  }
 0x27e PF: > { %s502_s11 = sand.u32 1, %s1030_s18   ;;  %p1381_p3 = scmp.ne.s32.totalorder %s1368_s25, 0 }
 0x27f   : > { %p1382_p7 = scmp.ge.s32.totalorder %s1042_s21, 2  ;;  %s503_s12 = scalar_lea.sflag [#allocation4], %s502_s11 }
 0x281   : > { %p799_p10 = pnand %p1382_p7, %p1381_p3 }
 0x283   : > { %1025 = dma.done.wait (!%p799_p10), %s503_s12, 128  }
 0x284   : > { %1027 = vsyncadd (!%p799_p10), %s503_s12, 4294967168  ;;  %p20_p13 = scmp.ge.s32.totalorder %s1208_s14, 4   ;;  %s1383_s18 = smov %s1034_s19 }
 0x285   : > { %s1384_s19 = smov %s1038_s20  ;;  %s1385_s20 = smov %s1218_s23 }
 0x286   : > { %s1386_s21 = smov %s1208_s14  ;;  %22 = sbr.rel (!%p20_p13) target bundleno = 7 (0x7), region = 98 }
 0x28d   :  { %508 = vsyncpa [#allocation3], 1 }
 0x28e   :  { %510 = vsyncpa [#allocation3 + $0x1], 1 }
 0x28f   :  { %511 = vsyncpa [#allocation6], 1 }
 0x290   :  { %512 = vsyncpa [#allocation9], 1 }
 0x291   :  { %513 = vsyncpa [#allocation4], 1 }
 0x292   :  { %515 = vsyncpa [#allocation4 + $0x1], 1 }

</bundles_post_ra>
